<compile_context>
chip_gen: v5e
topology: v5e:2x2
jax: 0.10.0
libtpu: 0.0.40
codegen_flags: <defaults>
</compile_context>

<pallas_src>
import jax
import jax.numpy as jnp
from jax.experimental import pallas as pl
from jax.experimental.pallas import tpu as pltpu

# ---- toy config (lane-dense: D_ESM and C_S are multiples of 128) -----------
B, L = 2, 8            # batch, sequence length
N_LAYERS = 6           # esm2_8M-like
K = N_LAYERS + 1       # layers + embedding layer -> len(esm_s_combine)
D_ESM = 128            # esm.embed_dim (toy; real esm2_3B = 2560)
C_S = 128              # cfg.trunk.sequence_state_dim (toy; real = 1024)
C_Z = 16               # cfg.trunk.pairwise_state_dim (toy)
N_TOKENS = 23          # residue_constants.restype_num + 3
N_TOK_PAD = 128        # embedding table padded to one full lane row
LN_EPS = 1e-5
TILE_R = 8             # row tile (toy; 256-512 v6e/v7x, 128 v5e)
BL = B * L


# ---- Pallas kernel ----------------------------------------------------------
def esmfold_embed_kernel(w_ref,      # SMEM (K,)            softmax(esm_s_combine)
                         esm_ref,    # VMEM (1, TILE_R, D)   bf16 layer-k slab
                         aa_ref,     # VMEM (TILE_R, 1)      int32
                         emb_ref,    # VMEM (N_TOK_PAD, C_S) bf16 (resident)
                         gamma_ref,  # VMEM (1, D)           f32  (resident)
                         beta_ref,   # VMEM (1, D)           f32  (resident)
                         w1_ref,     # VMEM (D, C_S)         bf16 (resident)
                         b1_ref,     # VMEM (1, C_S)         f32  (resident)
                         w2_ref,     # VMEM (C_S, C_S)       bf16 (resident)
                         b2_ref,     # VMEM (1, C_S)         f32  (resident)
                         out_ref,    # VMEM (TILE_R, C_S)    f32
                         acc_ref):   # VMEM scratch (TILE_R, D) f32
    k = pl.program_id(1)

    @pl.when(k == 0)
    def _():
        acc_ref[...] = jnp.zeros_like(acc_ref)

    # (softmax(esm_s_combine).unsqueeze(0) @ esm_s).squeeze(2):
    # streamed reduction over the K grid axis, f32 accumulator, bf16 slabs.
    acc_ref[...] += w_ref[k] * esm_ref[0].astype(jnp.float32)

    @pl.when(k == pl.num_programs(1) - 1)
    def _():
        x = acc_ref[...]
        # LayerNorm(esm_feats) in f32, two-pass (centered) variance.
        mu = jnp.mean(x, axis=-1, keepdims=True)
        xc = x - mu
        var = jnp.mean(xc * xc, axis=-1, keepdims=True)
        xn = xc * jax.lax.rsqrt(var + LN_EPS)
        xn = xn * gamma_ref[...] + beta_ref[...]

        # Linear -> ReLU -> Linear on the MXU: bf16 operands, f32 accumulation.
        h = jnp.dot(xn.astype(jnp.bfloat16), w1_ref[...],
                    preferred_element_type=jnp.float32)
        h = jnp.maximum(h + b1_ref[...], 0.0)
        s = jnp.dot(h.astype(jnp.bfloat16), w2_ref[...],
                    preferred_element_type=jnp.float32) + b2_ref[...]

        # s_s_0 += self.embedding(aa): in-kernel one-hot gather against the
        # resident padded table (no HBM round trip of a (B*L, c_s) aa_emb).
        tok = jax.lax.broadcasted_iota(jnp.int32, (aa_ref.shape[0], N_TOK_PAD), 1)
        onehot = jnp.where(tok == aa_ref[...], 1.0, 0.0).astype(jnp.bfloat16)
        aa_emb = jnp.dot(onehot, emb_ref[...], preferred_element_type=jnp.float32)

        out_ref[...] = (s + aa_emb).astype(out_ref.dtype)


# ---- wrapper ----------------------------------------------------------------
def esmfold_embed_for_folding_trunk(esm_s, aa, mask, params, *, tile_r=TILE_R):
    """Pallas version of ESMFold.embed_for_folding_trunk (post-LM part).

    esm_s: (B, L, K, D_ESM) per-layer ESM representations (stand-in for the
           frozen ESM-2 LM output).
    Returns (s_s_0, s_z_0, aa, residx, mask).
    """
    # TODO(synk): _af2_idx_to_esm_idx token remapping, bos/eos handling and
    # _compute_language_model_representations run inside the frozen external
    # ESM-2 LM; its stacked per-layer output `esm_s` is an input here.
    b, l, kk, d = esm_s.shape
    bl = b * l
    assert bl % tile_r == 0 and d % 128 == 0 and C_S % 128 == 0

    if mask is None:
        mask = jnp.ones_like(aa)

    w_softmax = jax.nn.softmax(params["esm_s_combine"].astype(jnp.float32))  # (K,)

    # Layer-major (K, B*L, D) so each (r, k) grid step DMAs one lane-dense
    # (TILE_R, D) bf16 slab.  TODO(synk): at production stack the LM layers
    # layer-major directly to skip this one-time HBM transpose.
    esm_s_km = jnp.transpose(esm_s.reshape(bl, kk, d), (1, 0, 2)).astype(jnp.bfloat16)

    aa_col = aa.reshape(bl, 1).astype(jnp.int32)

    # Embedding table padded to 128 token rows (rows >= N_TOKENS stay zero;
    # padding_idx=0 row is already zero in the table).
    emb_pad = jnp.zeros((N_TOK_PAD, C_S), jnp.bfloat16)
    emb_pad = emb_pad.at[:N_TOKENS].set(params["emb"].astype(jnp.bfloat16))

    gamma = params["ln_gamma"].astype(jnp.float32)[None, :]
    beta = params["ln_beta"].astype(jnp.float32)[None, :]
    w1 = params["w1"].astype(jnp.bfloat16)
    b1 = params["b1"].astype(jnp.float32)[None, :]
    w2 = params["w2"].astype(jnp.bfloat16)
    b2 = params["b2"].astype(jnp.float32)[None, :]

    const = lambda r, k: (0, 0)   # weights: DMA'd once, resident across steps
    grid = (bl // tile_r, kk)     # rows parallel, K = trailing reduction axis

    out = pl.pallas_call(
        esmfold_embed_kernel,
        out_shape=jax.ShapeDtypeStruct((bl, C_S), jnp.float32),
        grid=grid,
        in_specs=[
            pl.BlockSpec(memory_space=pltpu.MemorySpace.SMEM),        # w_softmax
            pl.BlockSpec((1, tile_r, d), lambda r, k: (k, r, 0)),     # esm_s slab
            pl.BlockSpec((tile_r, 1), lambda r, k: (r, 0)),           # aa indices
            pl.BlockSpec((N_TOK_PAD, C_S), const),                    # emb table
            pl.BlockSpec((1, d), const),                              # ln gamma
            pl.BlockSpec((1, d), const),                              # ln beta
            pl.BlockSpec((d, C_S), const),                            # w1
            pl.BlockSpec((1, C_S), const),                            # b1
            pl.BlockSpec((C_S, C_S), const),                          # w2
            pl.BlockSpec((1, C_S), const),                            # b2
        ],
        out_specs=pl.BlockSpec((tile_r, C_S), lambda r, k: (r, 0)),
        scratch_shapes=[pltpu.VMEM((tile_r, d), jnp.float32)],
        compiler_params=pltpu.CompilerParams(
            dimension_semantics=("parallel", "arbitrary"),
            vmem_limit_bytes=48 * 1024 * 1024),
    )(w_softmax, esm_s_km, aa_col, emb_pad, gamma, beta, w1, b1, w2, b2)

    s_s_0 = out.reshape(b, l, C_S)

    # cfg.use_esm_attn_map is False -> s_z_0 = s_s_0.new_zeros(B, L, L, c_z)
    s_z_0 = jnp.zeros((b, l, l, C_Z), jnp.float32)
    residx = jnp.broadcast_to(jnp.arange(l, dtype=jnp.int32)[None, :], (b, l))

    # TODO(synk): FoldingTrunk + structure module + post_processing heads
    # (distogram_head, lm_head, ptm_head, lddt_head, make_atom14_masks,
    # compute_tm, compute_predicted_aligned_error) are external sub-modules
    # and are not implemented here.
    return s_s_0, s_z_0, aa, residx, mask


# ---- pure-JAX f32 reference for the same math -------------------------------
def ref_embed(esm_s, aa, params):
    w = jax.nn.softmax(params["esm_s_combine"])
    x = jnp.einsum("k,blkd->bld", w, esm_s)
    mu = x.mean(-1, keepdims=True)
    var = ((x - mu) ** 2).mean(-1, keepdims=True)
    xn = (x - mu) / jnp.sqrt(var + LN_EPS)
    xn = xn * params["ln_gamma"] + params["ln_beta"]
    h = jnp.maximum(xn @ params["w1"] + params["b1"], 0.0)
    s = h @ params["w2"] + params["b2"]
    return s + params["emb"][aa]


# ---- deterministic parameter init -------------------------------------------
def make_params(key):
    ks = jax.random.split(key, 7)
    emb = 0.02 * jax.random.normal(ks[0], (N_TOKENS, C_S), jnp.float32)
    emb = emb.at[0].set(0.0)  # padding_idx=0
    return {
        "esm_s_combine": jnp.zeros((K,), jnp.float32),   # nn.Parameter(zeros)
        "ln_gamma": 1.0 + 0.1 * jax.random.normal(ks[1], (D_ESM,), jnp.float32),
        "ln_beta": 0.1 * jax.random.normal(ks[2], (D_ESM,), jnp.float32),
        "w1": 0.02 * jax.random.normal(ks[3], (D_ESM, C_S), jnp.float32),
        "b1": 0.01 * jax.random.normal(ks[4], (C_S,), jnp.float32),
        "w2": 0.02 * jax.random.normal(ks[5], (C_S, C_S), jnp.float32),
        "b2": 0.01 * jax.random.normal(ks[6], (C_S,), jnp.float32),
        "emb": emb,
    }


if __name__ == "__main__":
    key = jax.random.PRNGKey(0)
    k_esm, k_aa, k_params = jax.random.split(key, 3)

    params = make_params(k_params)
    # synthetic per-layer ESM-2 representations (B, L, K, D_ESM)
    esm_s = jax.random.normal(k_esm, (B, L, K, D_ESM), jnp.float32)
    aa = jax.random.randint(k_aa, (B, L), 0, 21, dtype=jnp.int32)
    mask = jnp.ones((B, L), jnp.int32)

    s_s_0, s_z_0, aa_out, residx, mask_out = jax.block_until_ready(
        esmfold_embed_for_folding_trunk(esm_s, aa, mask, params))

    ref = ref_embed(esm_s, aa, params)
    assert s_s_0.shape == (B, L, C_S)
    assert s_z_0.shape == (B, L, L, C_Z)
    assert residx.shape == (B, L)
    err = float(jnp.max(jnp.abs(s_s_0 - ref)))
    assert err < 2e-2, f"max abs err {err}"  # bf16 MXU / bf16 esm_s slabs

    print("KERNEL_OK")
</pallas_src>

<mosaic_0001>
module attributes {stable_mosaic.version = 11 : i64} {
  func.func @esmfold_embed_kernel(%arg0: i32, %arg1: i32, %arg2: memref<7xf32, #tpu.memory_space<smem>>, %arg3: memref<1x8x128xbf16, #tpu.memory_space<vmem>>, %arg4: memref<8x1xi32, #tpu.memory_space<vmem>>, %arg5: memref<128x128xbf16, #tpu.memory_space<vmem>>, %arg6: memref<1x128xf32, #tpu.memory_space<vmem>>, %arg7: memref<1x128xf32, #tpu.memory_space<vmem>>, %arg8: memref<128x128xbf16, #tpu.memory_space<vmem>>, %arg9: memref<1x128xf32, #tpu.memory_space<vmem>>, %arg10: memref<128x128xbf16, #tpu.memory_space<vmem>>, %arg11: memref<1x128xf32, #tpu.memory_space<vmem>>, %arg12: memref<8x128xf32, #tpu.memory_space<vmem>>, %arg13: memref<8x128xf32, #tpu.memory_space<vmem>>) attributes {dimension_semantics = [#tpu.dimension_semantics<parallel>, #tpu.dimension_semantics<arbitrary>], iteration_bounds = array<i64: 2, 7>, scalar_prefetch = 0 : i64, scratch_operands = 1 : i64, tpu.core_type = #tpu.core_type<tc>, window_params = [{transform_indices = @transform_0, window_bounds = array<i64: 7>}, {transform_indices = @transform_1, window_bounds = array<i64: 1, 8, 128>}, {transform_indices = @transform_2, window_bounds = array<i64: 8, 1>}, {pipeline_mode = #tpu.pipeline_mode<synchronous>, transform_indices = @transform_3, window_bounds = array<i64: 128, 128>}, {pipeline_mode = #tpu.pipeline_mode<synchronous>, transform_indices = @transform_4, window_bounds = array<i64: 1, 128>}, {pipeline_mode = #tpu.pipeline_mode<synchronous>, transform_indices = @transform_5, window_bounds = array<i64: 1, 128>}, {pipeline_mode = #tpu.pipeline_mode<synchronous>, transform_indices = @transform_6, window_bounds = array<i64: 128, 128>}, {pipeline_mode = #tpu.pipeline_mode<synchronous>, transform_indices = @transform_7, window_bounds = array<i64: 1, 128>}, {pipeline_mode = #tpu.pipeline_mode<synchronous>, transform_indices = @transform_8, window_bounds = array<i64: 128, 128>}, {pipeline_mode = #tpu.pipeline_mode<synchronous>, transform_indices = @transform_9, window_bounds = array<i64: 1, 128>}, {transform_indices = @transform_10, window_bounds = array<i64: 8, 128>}]} {
    %c0_i32 = arith.constant 0 : i32
    %0 = arith.cmpi eq, %arg1, %c0_i32 : i32
    %1 = arith.extui %0 : i1 to i32
    %c0_i32_0 = arith.constant 0 : i32
    %2 = arith.cmpi ne, %1, %c0_i32_0 : i32
    scf.if %2 {
      %cst = arith.constant 0.000000e+00 : f32
      %16 = vector.broadcast %cst : f32 to vector<8x128xf32>
      %c0_8 = arith.constant 0 : index
      %c0_9 = arith.constant 0 : index
      %17 = vector.load %arg13[%c0_8, %c0_9] : memref<8x128xf32, #tpu.memory_space<vmem>>, vector<8x128xf32>
      tpu.vector_store %arg13[%c0_8, %c0_9], %16 {strides = array<i32>} : memref<8x128xf32, #tpu.memory_space<vmem>>, vector<8x128xf32>,
    } else {
    }
    %c0 = arith.constant 0 : index
    %c0_1 = arith.constant 0 : index
    %3 = vector.load %arg13[%c0, %c0_1] : memref<8x128xf32, #tpu.memory_space<vmem>>, vector<8x128xf32>
    %4 = arith.index_cast %arg1 : i32 to index
    %5 = memref.load %arg2[%4] : memref<7xf32, #tpu.memory_space<smem>>
    %c0_2 = arith.constant 0 : index
    %c0_3 = arith.constant 0 : index
    %c0_4 = arith.constant 0 : index
    %6 = vector.load %arg3[%c0_2, %c0_3, %c0_4] : memref<1x8x128xbf16, #tpu.memory_space<vmem>>, vector<1x8x128xbf16>
    %7 = vector.shape_cast %6 : vector<1x8x128xbf16> to vector<8x128xbf16>
    %8 = arith.extf %7 : vector<8x128xbf16> to vector<8x128xf32>
    %9 = vector.broadcast %5 : f32 to vector<8x128xf32>
    %10 = arith.mulf %9, %8 : vector<8x128xf32>
    %11 = arith.addf %3, %10 : vector<8x128xf32>
    %c0_5 = arith.constant 0 : index
    %c0_6 = arith.constant 0 : index
    %12 = vector.load %arg13[%c0_5, %c0_6] : memref<8x128xf32, #tpu.memory_space<vmem>>, vector<8x128xf32>
    tpu.vector_store %arg13[%c0_5, %c0_6], %11 {strides = array<i32>} : memref<8x128xf32, #tpu.memory_space<vmem>>, vector<8x128xf32>,
    %c6_i32 = arith.constant 6 : i32
    %13 = arith.cmpi eq, %arg1, %c6_i32 : i32
    %14 = arith.extui %13 : i1 to i32
    %c0_i32_7 = arith.constant 0 : i32
    %15 = arith.cmpi ne, %14, %c0_i32_7 : i32
    scf.if %15 {
      %c0_8 = arith.constant 0 : index
      %c0_9 = arith.constant 0 : index
      %16 = vector.load %arg13[%c0_8, %c0_9] : memref<8x128xf32, #tpu.memory_space<vmem>>, vector<8x128xf32>
      %cst = arith.constant dense<0.000000e+00> : vector<8xf32>
      %17 = vector.multi_reduction <add>, %16, %cst [1] : vector<8x128xf32> to vector<8xf32>
      %18 = vector.shape_cast %17 : vector<8xf32> to vector<8x1xf32>
      %cst_10 = arith.constant 1.280000e+02 : f32
      %19 = vector.broadcast %cst_10 : f32 to vector<8x1xf32>
      %20 = arith.divf %18, %19 : vector<8x1xf32>
      %21 = vector.broadcast %20 : vector<8x1xf32> to vector<8x128xf32>
      %22 = arith.subf %16, %21 : vector<8x128xf32>
      %23 = arith.mulf %22, %22 : vector<8x128xf32>
      %cst_11 = arith.constant dense<0.000000e+00> : vector<8xf32>
      %24 = vector.multi_reduction <add>, %23, %cst_11 [1] : vector<8x128xf32> to vector<8xf32>
      %25 = vector.shape_cast %24 : vector<8xf32> to vector<8x1xf32>
      %cst_12 = arith.constant 1.280000e+02 : f32
      %26 = vector.broadcast %cst_12 : f32 to vector<8x1xf32>
      %27 = arith.divf %25, %26 : vector<8x1xf32>
      %cst_13 = arith.constant 9.99999974E-6 : f32
      %28 = vector.broadcast %cst_13 : f32 to vector<8x1xf32>
      %29 = arith.addf %27, %28 : vector<8x1xf32>
      %30 = math.rsqrt %29 : vector<8x1xf32>
      %31 = vector.broadcast %30 : vector<8x1xf32> to vector<8x128xf32>
      %32 = arith.mulf %22, %31 : vector<8x128xf32>
      %c0_14 = arith.constant 0 : index
      %c0_15 = arith.constant 0 : index
      %33 = vector.load %arg6[%c0_14, %c0_15] : memref<1x128xf32, #tpu.memory_space<vmem>>, vector<1x128xf32>
      %34 = vector.broadcast %33 : vector<1x128xf32> to vector<8x128xf32>
      %35 = arith.mulf %32, %34 : vector<8x128xf32>
      %c0_16 = arith.constant 0 : index
      %c0_17 = arith.constant 0 : index
      %36 = vector.load %arg7[%c0_16, %c0_17] : memref<1x128xf32, #tpu.memory_space<vmem>>, vector<1x128xf32>
      %37 = vector.broadcast %36 : vector<1x128xf32> to vector<8x128xf32>
      %38 = arith.addf %35, %37 : vector<8x128xf32>
      %39 = arith.truncf %38 : vector<8x128xf32> to vector<8x128xbf16>
      %c0_18 = arith.constant 0 : index
      %c0_19 = arith.constant 0 : index
      %40 = vector.load %arg8[%c0_18, %c0_19] : memref<128x128xbf16, #tpu.memory_space<vmem>>, vector<128x128xbf16>
      %cst_20 = arith.constant dense<0.000000e+00> : vector<8x128xf32>
      %41 = tpu.matmul %39, %40, %cst_20 {dimension_numbers = #tpu.dot_dimension_numbers<[1], [0], [0], [1], [0, 0, 1, 1], [], []>} : vector<8x128xbf16>, vector<128x128xbf16>, vector<8x128xf32> -> vector<8x128xf32>
      %c0_21 = arith.constant 0 : index
      %c0_22 = arith.constant 0 : index
      %42 = vector.load %arg9[%c0_21, %c0_22] : memref<1x128xf32, #tpu.memory_space<vmem>>, vector<1x128xf32>
      %43 = vector.broadcast %42 : vector<1x128xf32> to vector<8x128xf32>
      %44 = arith.addf %41, %43 : vector<8x128xf32>
      %cst_23 = arith.constant 0.000000e+00 : f32
      %45 = vector.broadcast %cst_23 : f32 to vector<8x128xf32>
      %46 = arith.maximumf %44, %45 : vector<8x128xf32>
      %47 = arith.truncf %46 : vector<8x128xf32> to vector<8x128xbf16>
      %c0_24 = arith.constant 0 : index
      %c0_25 = arith.constant 0 : index
      %48 = vector.load %arg10[%c0_24, %c0_25] : memref<128x128xbf16, #tpu.memory_space<vmem>>, vector<128x128xbf16>
      %cst_26 = arith.constant dense<0.000000e+00> : vector<8x128xf32>
      %49 = tpu.matmul %47, %48, %cst_26 {dimension_numbers = #tpu.dot_dimension_numbers<[1], [0], [0], [1], [0, 0, 1, 1], [], []>} : vector<8x128xbf16>, vector<128x128xbf16>, vector<8x128xf32> -> vector<8x128xf32>
      %c0_27 = arith.constant 0 : index
      %c0_28 = arith.constant 0 : index
      %50 = vector.load %arg11[%c0_27, %c0_28] : memref<1x128xf32, #tpu.memory_space<vmem>>, vector<1x128xf32>
      %51 = vector.broadcast %50 : vector<1x128xf32> to vector<8x128xf32>
      %52 = arith.addf %49, %51 : vector<8x128xf32>
      %53 = tpu.iota {dimensions = array<i32: 1>} : vector<8x128xi32>
      %c0_29 = arith.constant 0 : index
      %c0_30 = arith.constant 0 : index
      %54 = vector.load %arg4[%c0_29, %c0_30] : memref<8x1xi32, #tpu.memory_space<vmem>>, vector<8x1xi32>
      %55 = vector.broadcast %54 : vector<8x1xi32> to vector<8x128xi32>
      %56 = arith.cmpi eq, %53, %55 : vector<8x128xi32>
      %cst_31 = arith.constant 1.000000e+00 : f32
      %cst_32 = arith.constant 0.000000e+00 : f32
      %57 = vector.broadcast %cst_31 : f32 to vector<8x128xf32>
      %58 = vector.broadcast %cst_32 : f32 to vector<8x128xf32>
      %59 = arith.select %56, %57, %58 : vector<8x128xi1>, vector<8x128xf32>
      %60 = arith.truncf %59 : vector<8x128xf32> to vector<8x128xbf16>
      %c0_33 = arith.constant 0 : index
      %c0_34 = arith.constant 0 : index
      %61 = vector.load %arg5[%c0_33, %c0_34] : memref<128x128xbf16, #tpu.memory_space<vmem>>, vector<128x128xbf16>
      %cst_35 = arith.constant dense<0.000000e+00> : vector<8x128xf32>
      %62 = tpu.matmul %60, %61, %cst_35 {dimension_numbers = #tpu.dot_dimension_numbers<[1], [0], [0], [1], [0, 0, 1, 1], [], []>} : vector<8x128xbf16>, vector<128x128xbf16>, vector<8x128xf32> -> vector<8x128xf32>
      %63 = arith.addf %52, %62 : vector<8x128xf32>
      %c0_36 = arith.constant 0 : index
      %c0_37 = arith.constant 0 : index
      %64 = vector.load %arg12[%c0_36, %c0_37] : memref<8x128xf32, #tpu.memory_space<vmem>>, vector<8x128xf32>
      tpu.vector_store %arg12[%c0_36, %c0_37], %63 {strides = array<i32>} : memref<8x128xf32, #tpu.memory_space<vmem>>, vector<8x128xf32>,
    } else {
    }
    return
  }
  func.func @transform_0(%arg0: i32, %arg1: i32) -> i32 {
    %c0_i32 = arith.constant 0 : i32
    %c0_i32_0 = arith.constant 0 : i32
    return %c0_i32 : i32
  }
  func.func @transform_1(%arg0: i32, %arg1: i32) -> (i32, i32, i32) {
    %c0_i32 = arith.constant 0 : i32
    %c0_i32_0 = arith.constant 0 : i32
    return %arg1, %arg0, %c0_i32 : i32, i32, i32
  }
  func.func @transform_2(%arg0: i32, %arg1: i32) -> (i32, i32) {
    %c0_i32 = arith.constant 0 : i32
    %c0_i32_0 = arith.constant 0 : i32
    return %arg0, %c0_i32 : i32, i32
  }
  func.func @transform_3(%arg0: i32, %arg1: i32) -> (i32, i32) {
    %c0_i32 = arith.constant 0 : i32
    %c0_i32_0 = arith.constant 0 : i32
    %c0_i32_1 = arith.constant 0 : i32
    return %c0_i32, %c0_i32_0 : i32, i32
  }
  func.func @transform_4(%arg0: i32, %arg1: i32) -> (i32, i32) {
    %c0_i32 = arith.constant 0 : i32
    %c0_i32_0 = arith.constant 0 : i32
    %c0_i32_1 = arith.constant 0 : i32
    return %c0_i32, %c0_i32_0 : i32, i32
  }
  func.func @transform_5(%arg0: i32, %arg1: i32) -> (i32, i32) {
    %c0_i32 = arith.constant 0 : i32
    %c0_i32_0 = arith.constant 0 : i32
    %c0_i32_1 = arith.constant 0 : i32
    return %c0_i32, %c0_i32_0 : i32, i32
  }
  func.func @transform_6(%arg0: i32, %arg1: i32) -> (i32, i32) {
    %c0_i32 = arith.constant 0 : i32
    %c0_i32_0 = arith.constant 0 : i32
    %c0_i32_1 = arith.constant 0 : i32
    return %c0_i32, %c0_i32_0 : i32, i32
  }
  func.func @transform_7(%arg0: i32, %arg1: i32) -> (i32, i32) {
    %c0_i32 = arith.constant 0 : i32
    %c0_i32_0 = arith.constant 0 : i32
    %c0_i32_1 = arith.constant 0 : i32
    return %c0_i32, %c0_i32_0 : i32, i32
  }
  func.func @transform_8(%arg0: i32, %arg1: i32) -> (i32, i32) {
    %c0_i32 = arith.constant 0 : i32
    %c0_i32_0 = arith.constant 0 : i32
    %c0_i32_1 = arith.constant 0 : i32
    return %c0_i32, %c0_i32_0 : i32, i32
  }
  func.func @transform_9(%arg0: i32, %arg1: i32) -> (i32, i32) {
    %c0_i32 = arith.constant 0 : i32
    %c0_i32_0 = arith.constant 0 : i32
    %c0_i32_1 = arith.constant 0 : i32
    return %c0_i32, %c0_i32_0 : i32, i32
  }
  func.func @transform_10(%arg0: i32, %arg1: i32) -> (i32, i32) {
    %c0_i32 = arith.constant 0 : i32
    %c0_i32_0 = arith.constant 0 : i32
    return %arg0, %c0_i32 : i32, i32
  }
}

</mosaic_0001>

<bundles_post_ra>
// kernel: tpu_custom_call.1
= control target key start
LH: loop header
LB: loop body
LE: loop exit
PB: predicated region body
PF: predicated region fallthrough
CT: control target
= control target key end

     0   :  { %s1837_s0 = inlined_call_operand.vmem [shape: f32[7], index: 0, kind: input, shape index: {}]   ;;  %s1838_s1 = inlined_call_operand.hbm [shape: bf16[7,16,128], index: 1, kind: input, shape index: {}]   ;;  %s1839_s2 = inlined_call_operand.vmem [shape: s32[16,1], index: 2, kind: input, shape index: {}]   ;;  %s1840_s3 = inlined_call_operand.hbm [shape: bf16[128,128], index: 3, kind: input, shape index: {}]   ;;  %s1841_s4 = inlined_call_operand.vmem [shape: f32[1,128], index: 4, kind: input, shape index: {}]   ;;  %s1842_s5 = inlined_call_operand.vmem [shape: f32[1,128], index: 5, kind: input, shape index: {}]   ;;  %s1843_s6 = inlined_call_operand.hbm [shape: bf16[128,128], index: 6, kind: input, shape index: {}]   ;;  %s1844_s7 = inlined_call_operand.vmem [shape: f32[1,128], index: 7, kind: input, shape index: {}]   ;;  %s1845_s8 = inlined_call_operand.hbm [shape: bf16[128,128], index: 8, kind: input, shape index: {}]   ;;  %s1846_s9 = inlined_call_operand.vmem [shape: f32[1,128], index: 9, kind: input, shape index: {}]   ;;  %s1847_s10 = inlined_call_operand.hbm [shape: f32[16,128], index: 10, kind: output, shape index: {}]  }
   0x1   :  { %1852 = sst [smem:[#allocation22_spill]] %s1837_s0 }
   0x2   :  { %1853 = sst [smem:[#allocation23_spill]] %s1840_s3 }
   0x3   :  { %1854 = sst [smem:[#allocation24_spill]] %s1841_s4 }
   0x4   :  { %1855 = sst [smem:[#allocation25_spill]] %s1842_s5 }
   0x5   :  { %1856 = sst [smem:[#allocation26_spill]] %s1843_s6 }
   0x6   :  { %1857 = sst [smem:[#allocation27_spill]] %s1844_s7 }
   0x7   :  { %1858 = sst [smem:[#allocation28_spill]] %s1845_s8 }
   0x8   :  { %1859 = sst [smem:[#allocation29_spill]] %s1846_s9 }
   0x9   :  { %1860 = sst [smem:[#allocation30_spill]] %s1847_s10 }
   0xa   :  { %15 = vsyncpa [#allocation6], 0 }
   0xb   :  { %16 = vsyncpa [#allocation4], 0 }
   0xc   :  { %18 = vsyncpa [#allocation4 + $0x1], 0 }
   0xd   :  { %19 = vsyncpa [#allocation9], 0 }
   0xe   :  { %20 = vsyncpa [#allocation12], 0 }
   0xf   :  { %21 = vsyncpa [#allocation5], 0 }
  0x10   :  { %23 = vsyncpa [#allocation5 + $0x1], 0  ;;  %s1576_s13 = smov 0   ;;  %s1578_s14 = smov 0  }
  0x11   :  { %s1580_s15 = smov 0   ;;  %s1582_s16 = smov 0  }
  0x12   :  { %s1584_s17 = smov 0   ;;  %s1586_s18 = smov 0  }
  0x13   :  { %s1588_s19 = smov 0   ;;  %s1590_s20 = smov 0  }
  0x14   :  { %s1592_s21 = smov 0   ;;  %s1594_s22 = smov 0  }
  0x15   :  { %s1596_s23 = smov 0  }
  0x16 LB: > { %1861 = sst [smem:[#allocation19_spill]] %s1493_s19  ;;  %s934_s27 = sadd.s32 4294967295, %s1509_s23   ;;  %s1509_s23 = sphi %s1596_s23, %s29_s23   ;;  %s1505_s22 = sphi %s1594_s22, %s1894_s22   ;;  %s1501_s21 = sphi %s1592_s21, %s1893_s21   ;;  %s1497_s20 = sphi %s1590_s20, %s1892_s20   ;;  %s1493_s19 = sphi %s1588_s19, %s1891_s19   ;;  %s1489_s18 = sphi %s1586_s18, %s1890_s18   ;;  %s1485_s17 = sphi %s1584_s17, %s1889_s17   ;;  %s1481_s16 = sphi %s1582_s16, %s1888_s16   ;;  %s1477_s15 = sphi %s1580_s15, %s1887_s15   ;;  %s1473_s14 = sphi %s1578_s14, %s1886_s14   ;;  %s1469_s13 = sphi %s1576_s13, %s1885_s13  }
  0x17   : > { %s1862_s3 = sld [smem:[#allocation23_spill]]  ;;  %p936_p0 = scmp.ge.s32.totalorder %s1509_s23, 1 }
  0x18   : > { %p1636_p1 = scmp.eq.s32.totalorder %s934_s27, 0  ;;  %p1640_p2 = scmp.eq.s32.totalorder %s934_s27, 13 }
  0x19   : > { %p294_p3 = scmp.lt.s32.totalorder %s1509_s23, 15  ;;  %s1511_s11 = smov [#allocation8]  }
  0x1a   : > { %s317_s12 = sshll.u32 %s1511_s11, 4  ;;  %s1867_s0 = sld [smem:[#allocation22_spill]]  ;;  %s318_s12 = int_to_ptr.vmem [resolvable:$true] %s317_s12 }
  0x1b   : > { %p1645_p4 = pnand %p936_p0, %p294_p3  ;;  %s1512_s10 = smov 64  }
  0x1c   : > { %s1513_s9 = smov 4   ;;  %s1868_s6 = sld [smem:[#allocation26_spill]] }
  0x1d   : > { %s315_s26 = sshll.u32 %s1862_s3, 4  ;;  %p1101_p5 = pneg %p1645_p4  ;;  %s316_s26 = int_to_ptr.hbm [resolvable:$true] %s315_s26 }
  0x1e   : > { %s1514_s4 = smov [#allocation3]   ;;  %s1515_s25 = smov [#allocation10]  }
  0x1f   : > { %p1653_p6 = pnand %p1101_p5, %p1636_p1  ;;  %s337_s27 = sshll.u32 %s1515_s25, 4  ;;  %s338_s27 = int_to_ptr.vmem [resolvable:$true] %s337_s27 }
  0x20   : > { %s306_s3 = sshll.u32 %s1867_s0, 4  ;;  %s1869_s8 = sld [smem:[#allocation28_spill]]  ;;  %s307_s3 = int_to_ptr.vmem [resolvable:$true] %s306_s3 }
  0x21   : > { %1107 = dma.hbm_to_vmem [thread:$0]  (!%p1653_p6), %s316_s26, 1024, %s318_s12, [#allocation9], %s1512_s10, %s1512_s10, %s1513_s9  }
  0x22   : > { %s335_s5 = sshll.u32 %s1868_s6, 4  ;;  %s1516_s7 = smov [#allocation11]   ;;  %s336_s5 = int_to_ptr.hbm [resolvable:$true] %s335_s5 }
  0x23   : > { %1104 = dma.vmem_to_smem (!%p1653_p6), %s307_s3, 16, %s1514_s4, [#allocation6]  }
  0x24   : > { %1110 = dma.hbm_to_vmem [thread:$0]  (!%p1653_p6), %s336_s5, 1024, %s338_s27, [#allocation9], %s1512_s10, %s1512_s10, %s1513_s9  }
  0x25   : > { %s354_s3 = sshll.u32 %s1516_s7, 4  ;;  %s935_s4 = sadd.s32 4294967294, %s1509_s23   ;;  %s355_s3 = int_to_ptr.vmem [resolvable:$true] %s354_s3 }
  0x26   : > { %s352_s26 = sshll.u32 %s1869_s8, 4  ;;  %s38_s0 = sadd.s32 1, %s1501_s21  ;;  %s353_s26 = int_to_ptr.hbm [resolvable:$true] %s352_s26 }
  0x27   : > { %1113 = dma.hbm_to_vmem [thread:$0]  (!%p1653_p6), %s353_s26, 1024, %s355_s3, [#allocation12], %s1512_s10, %s1512_s10, %s1513_s9  }
  0x28   : > { %s41_s19 = sadd.s32 1, %s1505_s22  ;;  %p39_p7 = scmp.ge.s32.totalorder %s38_s0, 7 }
  0x29   : > { %s71_s5 = sadd.s32 1, %s1489_s18  ;;  %p78_p8 = scmp.ne.s32.totalorder %s1489_s18, %s1485_s17 }
  0x2a   : > { %p79_p9 = scmp.eq.s32.totalorder %s1509_s23, 0  ;;  %s1896_s0 = smov (%p39_p7, %s38_s0), 0 }
  0x2b   : > { %1870 = sst [smem:[#allocation20_spill]] %s1896_s0  ;;  %s1898_s19 = smov (!%p39_p7, %s41_s19), %s1505_s22 }
  0x2c   : > { %s66_s12 = ssub.s32 %s1501_s21, %s1896_s0  ;;  %p1686_p10 = por %p79_p9, %p78_p8 }
  0x2d   : > { %p43_p11 = scmp.ge.s32.totalorder %s1898_s19, 2  ;;  %p84_p12 = scmp.ne.s32.totalorder %s1485_s17, %s1481_s16 }
  0x2e   : > { %s270_s10 = sadd.s32 1, %s1477_s15  ;;  %p280_p13 = scmp.ne.s32.totalorder %s1477_s15, %s1473_s14 }
  0x2f   : > { %s1900_s19 = smov (%p43_p11, %s1898_s19), 0  ;;  %p1699_p0 = por %p1636_p1, %p84_p12 }
  0x30   : > { %1872 = sst [smem:[#allocation21_spill]] %s1900_s19  ;;  %p1705_p3 = por %p1640_p2, %p280_p13 }
  0x31   : > { %s67_s25 = ssub.s32 %s1505_s22, %s1900_s19  ;;  %p286_p5 = scmp.ne.s32.totalorder %s1473_s14, %s1469_s13 }
  0x32   : > { %s68_s16 = sor.u32 %s67_s25, %s66_s12  ;;  %p268_p6 = scmp.eq.s32.totalorder %s67_s25, 0 }
  0x33   : > { %p69_p7 = scmp.eq.s32.totalorder %s68_s16, 0  ;;  %p287_p8 = scmp.eq.s32.totalorder %s935_s4, 13 }
  0x34   : > { %s1714_s27 = scalar_select %p268_p6, %s1477_s15, %s270_s10  }
  0x35   : > { %s1717_s26 = scalar_select %p69_p7, %s1489_s18, %s71_s5  }
  0x36   : > { %p1719_p9 = por %p287_p8, %p286_p5  ;;  %p1126_p11 = scmp.lt.s32.totalorder %s1509_s23, 14 }
  0x37   : > { %s371_s29 = sand.u32 1, %s1489_s18   ;;  %s943_s3 = sshll.u32 %s1501_s21, 1 }
  0x38   : > { %s942_s6 = sshll.u32 %s371_s29, 2  ;;  %s379_s8 = sadd.s32 %s1505_s22, %s943_s3 }
  0x39   : > { %s944_s19 = sshll.u32 %s379_s8, 2  ;;  %s375_s0 = scalar_lea.vmem [#allocation7], %s942_s6 }
  0x3a   : > { %s385_s12 = sshll.u32 %s375_s0, 4  ;;  %s381_s4 = scalar_lea.hbm %s1838_s1, %s944_s19  ;;  %s386_s12 = int_to_ptr.vmem [resolvable:$true] %s385_s12 }
  0x3b   : > { %s383_s10 = sshll.u32 %s381_s4, 4  ;;  %p1115_p2 = pnand %p1126_p11, %p1686_p10  ;;  %s384_s10 = int_to_ptr.hbm [resolvable:$true] %s383_s10 }
  0x3c   : > { %s372_s5 = scalar_lea.sflag [#allocation4], %s371_s29  ;;  %401 = sbr.rel (%p1645_p4) target bundleno = 671 (0x29f), region = 60 }
  0x3d   : > { %1117 = dma.hbm_to_vmem [thread:$0]  (!%p1115_p2), %s384_s10, 64, %s386_s12, %s372_s5  }
  0x41   : > { %1448 = dma.done.wait (%p1636_p1), [#allocation6], 16  }
  0x42   : > { %1450 = vsyncadd (%p1636_p1), [#allocation6], 4294967280  ;;  %s408_s6 = sand.u32 1, %s1485_s17  }
  0x43   : > { %s947_s8 = sshll.u32 %s408_s6, 2  ;;  %s409_s0 = scalar_lea.sflag [#allocation4], %s408_s6 }
  0x44   : > { %s412_s19 = scalar_lea.vmem [#allocation7], %s947_s8 }
  0x45   : > { %1452 = dma.done.wait (%p1699_p0), %s409_s0, 64  }
  0x46   : > { %1454 = vsyncadd (%p1699_p0), %s409_s0, 4294967232 }
  0x47   : > { %1456 = dma.done.wait (%p1636_p1), [#allocation9], 2048  }
  0x48   : > { %1458 = vsyncadd (%p1636_p1), [#allocation9], 4294965248 }
  0x49   : > { %1460 = dma.done.wait (%p1636_p1), [#allocation12], 1024  }
  0x4a   : > { %1462 = vsyncadd (%p1636_p1), [#allocation12], 4294966272 }
  0x4b   : > { %433 = sfence }
  0x4c   : > { %s467_s30 = sand.u32 1, %s1473_s14   ;;  %p470_p4 = scmp.lt.s32.totalorder %s1497_s20, 1 }
  0x4d   : > { %s1755_s9 = sshll.u32 %s467_s30, 3  ;;  %s1876_s16 = sld [smem:[#allocation19_spill]] }
  0x4e   : > { %s471_s24 = scalar_select %p470_p4, %s1497_s20, 1 }
  0x4f   : > { %s469_s28 = scalar_lea.vmem [#allocation13], %s1755_s9 }
  0x50   : > { %s952_s29 = sshll.u32 %s471_s24, 3 }
  0x51   : > { %s1761_s25 = scalar_lea.vmem %s1839_s2, %s952_s29 }
  0x53   : > { %p953_p1 = scmp.ne.s32.totalorder %s1876_s16, 0 }
  0x55   : > { %477 = sbr.rel (%p953_p1) target bundleno = 92 (0x5c), region = 84 }
  0x5a   : > { %v1517_v0 = vmov 0.0  }
  0x5b   : > { %478 = vst [vmem:[#allocation2] sm:$0xff] %v1517_v0 }
  0x5c PF: > { %s1877_s4 = sld [smem:[#allocation19_spill]]  ;;  %v481_v1 = vld [vmem:[%s412_s19] sm:$0xf] }
  0x5d   : > { %v482_v2 = vunpack.c.l.bf16 %v481_v1 }
  0x62   : > { %s480_s10 = sld [smem:[#allocation3 + %s1877_s4]]  ;;  %v479_v3 = vld [vmem:[#allocation2] sm:$0xff]  ;;  %p954_p10 = scmp.ne.s32.totalorder %s1877_s4, 6 }
  0x63   : > { %s1878_s8 = sld [smem:[#allocation24_spill]] (!%p954_p10) }
  0x64   : > { %s1879_s24 = sld [smem:[#allocation25_spill]] (!%p954_p10) }
  0x65   : > { %s1880_s12 = sld [smem:[#allocation27_spill]] (!%p954_p10) }
  0x66   : > { %s1881_s4 = sld [smem:[#allocation29_spill]] (!%p954_p10) }
  0x68   : > { %v483_v4 = vstv %s480_s10 }
  0x69   : > { %v484_v5 = vmul.f32 %v483_v4, %v482_v2  ;;  %490 = sbr.rel (%p954_p10) target bundleno = 651 (0x28b), region = 88 }
  0x6b   : > { %v485_v6 = vadd.f32 %v484_v5, %v479_v3 }
  0x6d   : > { %486 = vst [vmem:[#allocation2] sm:$0xff] %v485_v6 }
  0x6e   : > { %v1518_v8 = vmov 128.0   ;;  %v1064_v9 = vld [vmem:[#allocation10 + $0x38] sm:$0xff]  ;;  %v1063_v20 = vld [vmem:[#allocation10 + $0x30] sm:$0xff]  ;;  %v1062_v21 = vld [vmem:[#allocation10 + $0x28] sm:$0xff]  ;;  %v1519_v26 = vmov 0   ;;  %v694_v59 = vlaneseq }
  0x6f   : > { %1236 = vrcp.f32 %v1518_v8  ;;  %598 = vmatpush.bf16.msra.mxu0 %v1064_v9  ;;  %v1061_v22 = vld [vmem:[#allocation10 + $0x20] sm:$0xff]  ;;  %v1060_v23 = vld [vmem:[#allocation10 + $0x18] sm:$0xff]  ;;  %v1059_v24 = vld [vmem:[#allocation10 + $0x10] sm:$0xff]  ;;  %1230 = vset.pattern.permute.xlu1 %v1519_v26  ;;  %v1520_v62 = vmov 1.0|1.0  }
  0x70   : > { %v1058_v25 = vld [vmem:[#allocation10 + $0x8] sm:$0xff]  ;;  %1231 = vset.pattern.permute.xlu0 %v1519_v26  ;;  %v1057_v27 = vld [vmem:[#allocation10] sm:$0xff]  ;;  %v696_v28 = vld [vmem:[%s1761_s25] sm:$0xff]  ;;  %v695_v60 = vand.u32 127, %v694_v59 }
  0x71   : > { %v1080_v29 = vld [vmem:[#allocation8 + $0x38] sm:$0xff]  ;;  %698 = vperm.xlu1 %1230, %v696_v28   ;;  %v1079_v33 = vld [vmem:[#allocation8 + $0x30] sm:$0xff]  ;;  %v1078_v36 = vld [vmem:[#allocation8 + $0x28] sm:$0xff] }
  0x72   : > { %v1072_v31 = vld [vmem:[#allocation11 + $0x38] sm:$0xff]  ;;  %767 = vmatpush.bf16.msra.mxu2 %v1080_v29  ;;  %v1071_v34 = vld [vmem:[#allocation11 + $0x30] sm:$0xff]  ;;  %v1070_v37 = vld [vmem:[#allocation11 + $0x28] sm:$0xff] }
  0x73   : > { %599 = vmatpush.bf16.msra.mxu0 %v1063_v20  ;;  %681 = vmatpush.bf16.msra.mxu1 %v1072_v31  ;;  %v1077_v38 = vld [vmem:[#allocation8 + $0x20] sm:$0xff]  ;;  %v1076_v42 = vld [vmem:[#allocation8 + $0x18] sm:$0xff]  ;;  %v1075_v45 = vld [vmem:[#allocation8 + $0x10] sm:$0xff] }
  0x74   : > { %v491_v7 = vld [vmem:[#allocation2] sm:$0xff]  ;;  %v1069_v39 = vld [vmem:[#allocation11 + $0x20] sm:$0xff]  ;;  %v1074_v49 = vld [vmem:[#allocation8 + $0x8] sm:$0xff] }
  0x75   : > { %492 = vadd.xlane.f32.xlu0 %v491_v7  ;;  %v1237_v10 = vpop.eup %1236  ;;  %v1232_v48 = vld [vmem:[%s1878_s8] ss:$0 sm:$0xff]  ;;  %v1073_v54 = vld [vmem:[#allocation8] sm:$0xff]  ;;  %v1068_v57 = vld [vmem:[#allocation11 + $0x18] sm:$0xff] }
  0x76   : > { %v495_v11 = vmul.f32 128.0, %v1237_v10  ;;  %vm499_vm0 = vweird.f32 %v1237_v10  ;;  %768 = vmatpush.bf16.msra.mxu2 %v1079_v33  ;;  %v1233_v52 = vld [vmem:[%s1879_s24] ss:$0 sm:$0xff]  ;;  %v1066_v63 = vld [vmem:[#allocation11 + $0x8] sm:$0xff]  ;;  %v1065_v0 = vld [vmem:[#allocation11] sm:$0xff] }
  0x77   : > { %600 = vmatpush.bf16.msra.mxu0 %v1062_v21  ;;  %682 = vmatpush.bf16.msra.mxu1 %v1071_v34  ;;  %v1067_v58 = vld [vmem:[#allocation11 + $0x10] sm:$0xff] }
  0x78   : > { %v496_v12 = vsub.f32 1.0, %v495_v11  ;;  %v1234_v1 = vld [vmem:[%s1880_s12] ss:$0 sm:$0xff] }
  0x79   : > { %v1235_v9 = vld [vmem:[%s1881_s4] ss:$0 sm:$0xff] }
  0x7a   : > { %v497_v13 = vmul.f32 %v1237_v10, %v496_v12  ;;  %769 = vmatpush.bf16.msra.mxu2 %v1078_v36 }
  0x7b   : > { %601 = vmatpush.bf16.msra.mxu0 %v1061_v22  ;;  %683 = vmatpush.bf16.msra.mxu1 %v1070_v37 }
  0x7c   : > { %v498_v14 = vadd.f32 %v1237_v10, %v497_v13 }
  0x7e   : > { %v500_v15 = vsel %vm499_vm0, %v1237_v10, %v498_v14  ;;  %770 = vmatpush.bf16.msra.mxu2 %v1077_v38 }
  0x7f   : > { %602 = vmatpush.bf16.msra.mxu0 %v1060_v23  ;;  %684 = vmatpush.bf16.msra.mxu1 %v1069_v39 }
  0x82   : > { %771 = vmatpush.bf16.msra.mxu2 %v1076_v42 }
  0x83   : > { %603 = vmatpush.bf16.msra.mxu0 %v1059_v24  ;;  %685 = vmatpush.bf16.msra.mxu1 %v1068_v57 }
  0x86   : > { %772 = vmatpush.bf16.msra.mxu2 %v1075_v45 }
  0x87   : > { %604 = vmatpush.bf16.msra.mxu0 %v1058_v25  ;;  %686 = vmatpush.bf16.msra.mxu1 %v1067_v58 }
  0x8a   : > { %773 = vmatpush.bf16.msra.mxu2 %v1074_v49 }
  0x8b   : > { %605 = vmatpush.bf16.msra.mxu0 %v1057_v27  ;;  %687 = vmatpush.bf16.msra.mxu1 %v1066_v63 }
  0x8e   : > { %774 = vmatpush.bf16.msra.mxu2 %v1073_v54 }
  0x8f   : > { %688 = vmatpush.bf16.msra.mxu1 %v1065_v0 }
  0xe3   : > { %v699_v61 = vpop.permute.xlu1 %698 }
  0xe4   : > { %vm700_vm4 = vcmp.eq.s32.totalorder %v695_v60, %v699_v61 }
  0xe5   : > { %vm1051_vm5 = vmpackc.low %vm700_vm4, %vm700_vm4 }
  0xe6   : > { %1052 = vmatmul.msk.bf16.vlgmr.msra.gmra.mxu2 %vm1051_vm5, %v1520_v62 }
  0xe8   : > { %v493_v16 = vpop.xlane.xlu0 %492 }
  0xe9   : > { %v501_v17 = vmul.f32 %v500_v15, %v493_v16 }
  0xeb   : > { %v502_v18 = vsub.f32 %v491_v7, %v501_v17 }
  0xed   : > { %v503_v19 = vmul.f32 %v502_v18, %v502_v18 }
  0xef   : > { %504 = vadd.xlane.f32.xlu0 %v503_v19 }
 0x162   : > { %v505_v30 = vpop.xlane.xlu0 %504 }
 0x163   : > { %v506_v32 = vmul.f32 %v505_v30, %v500_v15 }
 0x165   : > { %v507_v35 = vadd.f32 1e-05, %v506_v32 }
 0x167   : > { %1238 = vrsqrt.f32 %v507_v35  ;;  %vm514_vm2 = vweird.f32 %v507_v35 }
 0x169   : > { %v776_v7 = vpop.f32.mrf.mxu2 }
 0x16d   : > { %v1239_v40 = vpop.eup %1238 }
 0x16e   : > { %v509_v41 = vmul.f32 %v1239_v40, %v507_v35  ;;  %vm515_vm1 = vweird.f32 %v1239_v40 }
 0x16f   : > { %vm516_vm3 = vmor %vm514_vm2, %vm515_vm1 }
 0x170   : > { %v510_v43 = vmul.f32 %v1239_v40, %v509_v41 }
 0x171   : > { %v778_v8 = vpop.f32.mrf.mxu2 }
 0x172   : > { %v511_v44 = vmul.f32 0.5, %v510_v43 }
 0x174   : > { %v512_v46 = vsub.f32 1.5, %v511_v44 }
 0x176   : > { %v513_v47 = vmul.f32 %v1239_v40, %v512_v46 }
 0x178   : > { %v517_v50 = vsel %vm516_vm3, %v1239_v40, %v513_v47 }
 0x179   : > { %v518_v51 = vmul.f32 %v517_v50, %v502_v18 }
 0x17b   : > { %v523_v53 = vmul.f32 %v1232_v48, %v518_v51 }
 0x17d   : > { %v528_v55 = vadd.f32 %v1233_v52, %v523_v53 }
 0x17f   : > { %v529_v56 = vpack.c.bf16 %v528_v55, %v528_v55 }
 0x181   : > { %606 = vmatmul.bf16.vlgmr.msra.gmra.mxu0 %v529_v56 }
 0x1fe   : > { %v607_v2 = vpop.f32.mrf.mxu0 }
 0x1ff   : > { %v608_v3 = vadd.f32 %v1234_v1, %v607_v2 }
 0x201   : > { %v611_v4 = vmax.f32 %v608_v3, 0.0 }
 0x203   : > { %v612_v5 = vpack.c.bf16 %v611_v4, %v611_v4 }
 0x205   : > { %689 = vmatmul.bf16.vlgmr.msra.gmra.mxu1 %v612_v5 }
 0x206   : > { %v609_v6 = vpop.f32.mrf.mxu0 }
 0x282   : > { %v690_v10 = vpop.f32.mrf.mxu1 }
 0x283   : > { %v691_v11 = vadd.f32 %v1235_v9, %v690_v10 }
 0x285   : > { %v780_v12 = vadd.f32 %v776_v7, %v691_v11 }
 0x287   : > { %781 = vst [vmem:[%s469_s28] sm:$0xff] %v780_v12 }
 0x28a   : > { %v692_v13 = vpop.f32.mrf.mxu1 }
 0x28b PF: > { %s1054_s10 = sshll.u32 %s1497_s20, 3  ;;  %s1882_s8 = sld [smem:[#allocation30_spill]] }
 0x28c   : > { %s795_s19 = sshll.u32 %s469_s28, 4  ;;  %s783_s29 = scalar_lea.sflag [#allocation5], %s467_s30  ;;  %s796_s19 = int_to_ptr.vmem [resolvable:$true] %s795_s19 }
 0x291   : > { %s793_s0 = scalar_lea.hbm %s1882_s8, %s1054_s10  ;;  %s1395_s16 = scalar_lea.hbm %s1882_s8, 16 }
 0x292   : > { %s797_s24 = sshll.u32 %s793_s0, 4  ;;  %s798_s24 = int_to_ptr.hbm [resolvable:$true] %s797_s24 }
 0x293   : > { %s1389_s3 = sshra.s32 %s798_s24, 4  ;;  %s1390_s3 = int_to_ptr.hbm [resolvable:$true] %s1389_s3 }
 0x294   : > { %s1391_s12 = scalar_lea.hbm %s1390_s3, 8  ;;  %p1396_p5 = scmp.lt.s32.totalorder %s1390_s3, %s1882_s8 }
 0x295   : > { %p1392_p12 = scmp.ne.s32.totalorder %s1390_s3, %s1391_s12  ;;  %p1397_p6 = scmp.lt.s32.totalorder %s1395_s16, %s1391_s12 }
 0x297   : > { %p1393_p13 = pnand %p1392_p12, %p1705_p3  ;;  %p1398_p7 = por %p1397_p6, %p1396_p5 }
 0x299   : > { %p1394_p0 = pneg %p1393_p13 }
 0x29b   : > { %p1399_p8 = pnand %p1398_p7, %p1394_p0 }
 0x29d   : > { %1402 = shalt.err (!%p1399_p8)
}
 0x29e   : > { %1099 = dma.vmem_to_hbm [thread:$0]  (%p1705_p3), %s796_s19, 128, %s798_s24, %s783_s29  }
 0x29f PF: > { %p1131_p11 = scmp.ge.s32.totalorder %s1509_s23, 2  ;;  %s809_s30 = sand.u32 1, %s1469_s13  }
 0x2a0   : > { %s810_s9 = scalar_lea.sflag [#allocation5], %s809_s30 }
 0x2a1   : > { %p1119_p2 = pnand %p1131_p11, %p1719_p9 }
 0x2a3   : > { %p1120_p4 = pneg %p1119_p2 }
 0x2a5   : > { %1464 = dma.done.wait (%p1120_p4), %s810_s9, 128  }
 0x2a6   : > { %1466 = vsyncadd (%p1120_p4), %s810_s9, 4294967168  ;;  %s29_s23 = sadd.s32 1, %s1509_s23   ;;  %s1883_s11 = sld [smem:[#allocation20_spill]] }
 0x2a7   : > { %p26_p1 = scmp.ge.s32.totalorder %s29_s23, 16   ;;  %s1884_s28 = sld [smem:[#allocation21_spill]] }
 0x2a8   : > { %s1885_s13 = smov %s1473_s14  ;;  %s1886_s14 = smov %s1477_s15 }
 0x2a9   : > { %s1887_s15 = smov %s1714_s27  ;;  %s1888_s16 = smov %s1485_s17 }
 0x2aa   : > { %s1889_s17 = smov %s1489_s18  ;;  %s1890_s18 = smov %s1717_s26 }
 0x2ab   : > { %s1891_s19 = smov %s1501_s21  ;;  %s1892_s20 = smov %s1505_s22 }
 0x2ac   : > { %s1893_s21 = smov %s1883_s11  ;;  %28 = sbr.rel (!%p26_p1) target bundleno = 22 (0x16), region = 133 }
 0x2ad   : > { %s1894_s22 = smov %s1884_s28 }
 0x2b1   :  { %816 = vsyncpa [#allocation4], 1 }
 0x2b2   :  { %818 = vsyncpa [#allocation4 + $0x1], 1 }
 0x2b3   :  { %819 = vsyncpa [#allocation9], 1 }
 0x2b4   :  { %820 = vsyncpa [#allocation12], 1 }
 0x2b5   :  { %821 = vsyncpa [#allocation5], 1 }
 0x2b6   :  { %823 = vsyncpa [#allocation5 + $0x1], 1 }
 0x2b7   :  { %824 = vsyncpa [#allocation6], 1 }
 0x2b8   :  { %826 = vsyncpa [#allocation6 + $0x1], 1 }

</bundles_post_ra>
